<compile_context>
chip_gen: v6e
topology: v6e:2x2x1
jax: 0.10.0
libtpu: 0.0.40
codegen_flags: <defaults>
</compile_context>

<pallas_src>
import jax
import jax.numpy as jnp
from jax.experimental import pallas as pl
from jax.experimental.pallas import tpu as pltpu


def _round_up(x, m):
    return ((x + m - 1) // m) * m


# Column offsets of the three weight/bias sections inside the packed slab.
# Each section is padded to a 128-lane boundary so every in-kernel slice
# starts on a lane-tile boundary (no lane rotate / relayout).
_COL_W1 = 0      # Linear(c_dim, 16)
_COL_W2 = 128    # Linear(16, 32)
_COL_W3 = 256    # Linear(32, 2*d_model)


def film_kernel(c_ref, p_ref, gb_ref):
    """3-layer MLP; writes one fused lane-dense (TB, 2*d_model) output block."""
    c_dim = c_ref.shape[-1]
    two_d = gb_ref.shape[-1]
    k_bias = p_ref.shape[0] - 1          # biases live in the last slab row

    c = c_ref[...]

    # Layer 1: (TB, c_dim) @ (c_dim, 16) + b1, ReLU
    w1 = p_ref[0:c_dim, _COL_W1:_COL_W1 + 16]
    b1 = p_ref[k_bias:k_bias + 1, _COL_W1:_COL_W1 + 16]
    h1 = jnp.maximum(jnp.dot(c, w1, preferred_element_type=jnp.float32) + b1, 0.0)

    # Layer 2: (TB, 16) @ (16, 32) + b2, ReLU
    w2 = p_ref[0:16, _COL_W2:_COL_W2 + 32]
    b2 = p_ref[k_bias:k_bias + 1, _COL_W2:_COL_W2 + 32]
    h2 = jnp.maximum(jnp.dot(h1, w2, preferred_element_type=jnp.float32) + b2, 0.0)

    # Layer 3: (TB, 32) @ (32, 2*d_model) + b3  -> fused gamma|beta slab.
    w3 = p_ref[0:32, _COL_W3:_COL_W3 + two_d]
    b3 = p_ref[k_bias:k_bias + 1, _COL_W3:_COL_W3 + two_d]
    gb = jnp.dot(h2, w3, preferred_element_type=jnp.float32) + b3
    gb_ref[...] = gb.astype(gb_ref.dtype)


def pack_params(params, c_dim, d_model):
    """Pack (w1,b1,w2,b2,w3,b3) into a single (K_max+1, 256+pad(2*d_model)) slab.

    Rows 0:K_i hold weight i (stored (in_features, out_features)); the last
    row holds all three biases. Each section starts at a 128-lane offset.
    """
    w1, b1, w2, b2, w3, b3 = params
    k_max = max(_round_up(c_dim, 8), 32)
    n3 = _round_up(2 * d_model, 128)
    slab = jnp.zeros((k_max + 1, _COL_W3 + n3), jnp.float32)
    slab = slab.at[0:c_dim, _COL_W1:_COL_W1 + 16].set(w1)
    slab = slab.at[k_max, _COL_W1:_COL_W1 + 16].set(b1.reshape(-1))
    slab = slab.at[0:16, _COL_W2:_COL_W2 + 32].set(w2)
    slab = slab.at[k_max, _COL_W2:_COL_W2 + 32].set(b2.reshape(-1))
    slab = slab.at[0:32, _COL_W3:_COL_W3 + 2 * d_model].set(w3)
    slab = slab.at[k_max, _COL_W3:_COL_W3 + 2 * d_model].set(b3.reshape(-1))
    return slab


def film_generator(c, param_slab, d_model, *, max_batch_tile=512):
    """Runs the fused FiLM MLP and returns (gamma, beta)."""
    B, c_dim = c.shape
    two_d = 2 * d_model

    # Batch tile: one block for small B; large 8-aligned tiles otherwise so the
    # pipeline amortizes the ~0.35us/step overhead and overlaps the c DMA.
    tb = B if B <= max_batch_tile else max_batch_tile
    grid = (pl.cdiv(B, tb),)

    gb = pl.pallas_call(
        film_kernel,
        out_shape=jax.ShapeDtypeStruct((B, two_d), jnp.float32),
        grid_spec=pltpu.PrefetchScalarGridSpec(
            num_scalar_prefetch=0,
            grid=grid,
            in_specs=[
                pl.BlockSpec((tb, c_dim), lambda i: (i, 0)),
                # Full slab, constant block index -> VMEM-resident across steps.
                pl.BlockSpec(param_slab.shape, lambda i: (0, 0)),
            ],
            out_specs=pl.BlockSpec((tb, two_d), lambda i: (i, 0)),
        ),
        compiler_params=pltpu.CompilerParams(
            dimension_semantics=("parallel",)),  # shards batch across TCs on v7x
    )(c, param_slab)

    # torch.chunk(gamma_beta, 2, dim=-1): free XLA slice outside the kernel.
    return gb[:, :d_model], gb[:, d_model:]


def init_params(key, c_dim, d_model):
    """Deterministic init mirroring nn.Linear default (uniform +-1/sqrt(fan_in)).
    Weights stored as (in_features, out_features)."""
    dims = [(c_dim, 16), (16, 32), (32, 2 * d_model)]
    params = []
    for fan_in, fan_out in dims:
        key, kw, kb = jax.random.split(key, 3)
        bound = 1.0 / float(fan_in) ** 0.5
        w = jax.random.uniform(kw, (fan_in, fan_out), jnp.float32, -bound, bound)
        b = jax.random.uniform(kb, (fan_out,), jnp.float32, -bound, bound)
        params += [w, b]
    return tuple(params)


def film_reference(c, params):
    """Pure-JAX reference for correctness check."""
    w1, b1, w2, b2, w3, b3 = params
    h = jnp.maximum(c @ w1 + b1, 0.0)
    h = jnp.maximum(h @ w2 + b2, 0.0)
    gb = h @ w3 + b3
    d = gb.shape[-1] // 2
    return gb[:, :d], gb[:, d:]


if __name__ == "__main__":
    # Small shapes implied by the module: batch=2, c_dim=4, d_model=32.
    batch, c_dim, d_model, n_layers = 2, 4, 32, 2  # n_layers only affects reuse

    key = jax.random.PRNGKey(0)
    key, kc = jax.random.split(key)
    c = jax.random.normal(kc, (batch, c_dim), jnp.float32)
    params = init_params(key, c_dim, d_model)
    slab = pack_params(params, c_dim, d_model)

    gamma, beta = film_generator(c, slab, d_model)
    gamma = jax.block_until_ready(gamma)
    beta = jax.block_until_ready(beta)

    g_ref, b_ref = film_reference(c, params)
    assert gamma.shape == (batch, d_model) and beta.shape == (batch, d_model)
    assert jnp.allclose(gamma, g_ref, atol=1e-5, rtol=1e-5)
    assert jnp.allclose(beta, b_ref, atol=1e-5, rtol=1e-5)

    print("KERNEL_OK")
</pallas_src>

<mosaic_0001>
module attributes {stable_mosaic.version = 11 : i64} {
  func.func @film_kernel(%arg0: i32, %arg1: memref<2x4xf32, #tpu.memory_space<vmem>>, %arg2: memref<33x384xf32, #tpu.memory_space<vmem>>, %arg3: memref<2x64xf32, #tpu.memory_space<vmem>>) attributes {dimension_semantics = [#tpu.dimension_semantics<parallel>], iteration_bounds = array<i64: 1>, scalar_prefetch = 0 : i64, scratch_operands = 0 : i64, tpu.core_type = #tpu.core_type<tc>, window_params = [{transform_indices = @transform_0, window_bounds = array<i64: 2, 4>}, {pipeline_mode = #tpu.pipeline_mode<synchronous>, transform_indices = @transform_1, window_bounds = array<i64: 33, 384>}, {transform_indices = @transform_2, window_bounds = array<i64: 2, 64>}]} {
    %c0 = arith.constant 0 : index
    %c0_0 = arith.constant 0 : index
    %0 = vector.load %arg1[%c0, %c0_0] : memref<2x4xf32, #tpu.memory_space<vmem>>, vector<2x4xf32>
    %c0_1 = arith.constant 0 : index
    %c0_2 = arith.constant 0 : index
    %1 = vector.load %arg2[%c0_1, %c0_2] : memref<33x384xf32, #tpu.memory_space<vmem>>, vector<4x16xf32>
    %c32 = arith.constant 32 : index
    %c0_3 = arith.constant 0 : index
    %2 = vector.load %arg2[%c32, %c0_3] : memref<33x384xf32, #tpu.memory_space<vmem>>, vector<1x16xf32>
    %cst = arith.constant dense<0.000000e+00> : vector<2x16xf32>
    %3 = tpu.matmul %0, %1, %cst {dimension_numbers = #tpu.dot_dimension_numbers<[1], [0], [0], [1], [0, 0, 1, 1], [], []>} : vector<2x4xf32>, vector<4x16xf32>, vector<2x16xf32> -> vector<2x16xf32>
    %4 = vector.broadcast %2 : vector<1x16xf32> to vector<2x16xf32>
    %5 = arith.addf %3, %4 : vector<2x16xf32>
    %cst_4 = arith.constant 0.000000e+00 : f32
    %6 = vector.broadcast %cst_4 : f32 to vector<2x16xf32>
    %7 = arith.maximumf %5, %6 : vector<2x16xf32>
    %c0_5 = arith.constant 0 : index
    %c128 = arith.constant 128 : index
    %8 = vector.load %arg2[%c0_5, %c128] : memref<33x384xf32, #tpu.memory_space<vmem>>, vector<16x32xf32>
    %c32_6 = arith.constant 32 : index
    %c128_7 = arith.constant 128 : index
    %9 = vector.load %arg2[%c32_6, %c128_7] : memref<33x384xf32, #tpu.memory_space<vmem>>, vector<1x32xf32>
    %cst_8 = arith.constant dense<0.000000e+00> : vector<2x32xf32>
    %10 = tpu.matmul %7, %8, %cst_8 {dimension_numbers = #tpu.dot_dimension_numbers<[1], [0], [0], [1], [0, 0, 1, 1], [], []>} : vector<2x16xf32>, vector<16x32xf32>, vector<2x32xf32> -> vector<2x32xf32>
    %11 = vector.broadcast %9 : vector<1x32xf32> to vector<2x32xf32>
    %12 = arith.addf %10, %11 : vector<2x32xf32>
    %cst_9 = arith.constant 0.000000e+00 : f32
    %13 = vector.broadcast %cst_9 : f32 to vector<2x32xf32>
    %14 = arith.maximumf %12, %13 : vector<2x32xf32>
    %c0_10 = arith.constant 0 : index
    %c256 = arith.constant 256 : index
    %15 = vector.load %arg2[%c0_10, %c256] : memref<33x384xf32, #tpu.memory_space<vmem>>, vector<32x64xf32>
    %c32_11 = arith.constant 32 : index
    %c256_12 = arith.constant 256 : index
    %16 = vector.load %arg2[%c32_11, %c256_12] : memref<33x384xf32, #tpu.memory_space<vmem>>, vector<1x64xf32>
    %cst_13 = arith.constant dense<0.000000e+00> : vector<2x64xf32>
    %17 = tpu.matmul %14, %15, %cst_13 {dimension_numbers = #tpu.dot_dimension_numbers<[1], [0], [0], [1], [0, 0, 1, 1], [], []>} : vector<2x32xf32>, vector<32x64xf32>, vector<2x64xf32> -> vector<2x64xf32>
    %18 = vector.broadcast %16 : vector<1x64xf32> to vector<2x64xf32>
    %19 = arith.addf %17, %18 : vector<2x64xf32>
    %c0_14 = arith.constant 0 : index
    %c0_15 = arith.constant 0 : index
    %20 = vector.load %arg3[%c0_14, %c0_15] : memref<2x64xf32, #tpu.memory_space<vmem>>, vector<2x64xf32>
    tpu.vector_store %arg3[%c0_14, %c0_15], %19 {strides = array<i32>} : memref<2x64xf32, #tpu.memory_space<vmem>>, vector<2x64xf32>,
    return
  }
  func.func @transform_0(%arg0: i32) -> (i32, i32) {
    %c0_i32 = arith.constant 0 : i32
    %c0_i32_0 = arith.constant 0 : i32
    return %arg0, %c0_i32 : i32, i32
  }
  func.func @transform_1(%arg0: i32) -> (i32, i32) {
    %c0_i32 = arith.constant 0 : i32
    %c0_i32_0 = arith.constant 0 : i32
    %c0_i32_1 = arith.constant 0 : i32
    return %c0_i32, %c0_i32_0 : i32, i32
  }
  func.func @transform_2(%arg0: i32) -> (i32, i32) {
    %c0_i32 = arith.constant 0 : i32
    %c0_i32_0 = arith.constant 0 : i32
    return %arg0, %c0_i32 : i32, i32
  }
}

</mosaic_0001>

<bundles_post_ra>
// kernel: tpu_custom_call.1
= control target key start
LH: loop header
LB: loop body
LE: loop exit
PB: predicated region body
PF: predicated region fallthrough
CT: control target
= control target key end

     0   :  { %7 = vsyncpa [#allocation3], 0  ;;  %s436_s0 = inlined_call_operand.hbm [shape: f32[2,4], index: 0, kind: input, shape index: {}]   ;;  %s437_s1 = inlined_call_operand.hbm [shape: f32[33,384], index: 1, kind: input, shape index: {}]   ;;  %s438_s2 = inlined_call_operand.hbm [shape: f32[2,64], index: 2, kind: output, shape index: {}]  }
   0x1   :  { %8 = vsyncpa [#allocation6], 0 }
   0x2   :  { %9 = vsyncpa [#allocation4], 0  ;;  %s405_s9 = smov [#allocation2]   ;;  %s406_s11 = smov [#allocation5]  }
   0x3   :  { %s16_s10 = sshll.u32 %s405_s9, 4  ;;  %s25_s12 = sshll.u32 %s406_s11, 4  ;;  %s17_s10 = int_to_ptr.vmem [resolvable:$true] %s16_s10  ;;  %s26_s12 = int_to_ptr.vmem [resolvable:$true] %s25_s12 }
   0x4   :  { %s347_s13 = scalar_lea.vmem %s17_s10, 32  ;;  %p352_p1 = scmp.lt.s32.totalorder %s17_s10, %s17_s10 }
   0x5   :  { %p348_p0 = scmp.ne.s32.totalorder %s17_s10, %s347_s13  ;;  %p353_p2 = scmp.lt.s32.totalorder %s347_s13, %s347_s13 }
   0x7   :  { %p354_p3 = por %p353_p2, %p352_p1 }
   0x9   :  { %p355_p4 = pnand %p354_p3, %p348_p0 }
   0xb   :  { %358 = shalt.err (!%p355_p4)
}
   0xc   :  { %19 = dma.hbm_to_vmem [thread:$0]  %s436_s0, 32, %s17_s10, [#allocation3]  }
   0xd   :  { %s367_s16 = scalar_lea.vmem %s26_s12, 1920  ;;  %p372_p6 = scmp.lt.s32.totalorder %s26_s12, %s26_s12 }
   0xe   :  { %p368_p5 = scmp.ne.s32.totalorder %s26_s12, %s367_s16  ;;  %p373_p7 = scmp.lt.s32.totalorder %s367_s16, %s367_s16 }
  0x10   :  { %p374_p8 = por %p373_p7, %p372_p6 }
  0x12   :  { %p375_p9 = pnand %p374_p8, %p368_p5 }
  0x14   :  { %378 = shalt.err (!%p375_p9)
}
  0x15   :  { %s407_s17 = smov 384   ;;  %s408_s18 = smov 24  }
  0x16   :  { %31 = dma.hbm_to_vmem [thread:$0]  %s437_s1, 1920, %s26_s12, [#allocation6], %s407_s17, %s407_s17, %s408_s18  }
  0x17   :  { %399 = dma.done.wait [#allocation3], 32  }
  0x18   :  { %400 = vsyncadd [#allocation3], 4294967264 }
  0x19   :  { %401 = dma.done.wait [#allocation6], 1920  }
  0x1a   :  { %402 = vsyncadd [#allocation6], 4294965376  ;;  %v409_v0 = vmov 0.0   ;;  %vm410_vm0 = vmmov 0   ;;  %vm45_vm1 = vcmask 1043456   ;;  %vm41_vm2 = vcmask 31744  }
  0x1b   :  { %309 = vmatprep.subr.mxu1 %v409_v0  ;;  %311 = vmatprep.mubr.msk.f32.mxu1 %vm410_vm0, %v409_v0  ;;  %v39_v1 = vld [vmem:[#allocation5] sm:$0xf]  ;;  %v38_v2 = vld [vmem:[#allocation2] sm:$0x3]  ;;  %v120_v4 = vld [vmem:[#allocation5 + $0x8] sm:$0xff]  ;;  %vm123_vm3 = vcmask 130048  }
  0x1c   :  { %321 = vmatprep.subr.mxu0 %v409_v0  ;;  %329 = vmatprep.mubr.msk.f32.mxu0 %vm410_vm0, %v409_v0  ;;  %v121_v3 = vld [vmem:[#allocation5 + $0x20] sm:$0xff]  ;;  %v201_v5 = vld [vmem:[#allocation5 + $0x58] sm:$0xff]  ;;  %v199_v12 = vld [vmem:[#allocation5 + $0x28] sm:$0xff]  ;;  %vm203_vm4 = vcmask 261120   ;;  %s411_s0 = smov [#allocation7]   ;;  %vm277_vm5 = vcmask 517120  }
  0x1d   :  { %310 = vmatpush3.msk.msra.mxu1 %vm45_vm1, %v39_v1  ;;  %322 = vmatpush3.msra.mxu0 %v201_v5  ;;  %v40_v6 = vld [vmem:[#allocation5 + $0x60] ss:$0 sm:$0xff]  ;;  %v198_v13 = vld [vmem:[#allocation5 + $0x10] sm:$0xff]  ;;  %v122_v14 = vld [vmem:[#allocation5 + $0x68] ss:$0 sm:$0xff]  ;;  %s285_s1 = sshll.u32 %s411_s0, 4  ;;  %s286_s1 = int_to_ptr.vmem [resolvable:$true] %s285_s1 }
  0x1e   :  { %312 = vmatmul.mubr.msk.f32.vlgmr.msra.gmra.mxu1 %vm41_vm2, %v38_v2  ;;  %314 = vmatprep.subr.mxu1 %v409_v0  ;;  %v200_v11 = vld [vmem:[#allocation5 + $0x40] sm:$0xff]  ;;  %v202_v19 = vld [vmem:[#allocation5 + $0x70] ss:$0 sm:$0xff]  ;;  %s379_s21 = scalar_lea.vmem %s286_s1, 32  ;;  %p384_p11 = scmp.lt.s32.totalorder %s286_s1, %s286_s1 }
  0x1f   :  { %318 = vmatprep.mubr.msk.f32.mxu1 %vm410_vm0, %v409_v0  ;;  %315 = vmatpush3.msra.mxu1 %v121_v3  ;;  %p380_p10 = scmp.ne.s32.totalorder %s286_s1, %s379_s21  ;;  %p385_p12 = scmp.lt.s32.totalorder %s379_s21, %s379_s21 }
  0x20   :  { %316 = vmatprep.subr.mxu1 %v409_v0  ;;  %323 = vmatprep.subr.mxu0 %v409_v0 }
  0x21   :  { %317 = vmatpush3.msra.mxu1 %v120_v4  ;;  %324 = vmatpush3.msra.mxu0 %v200_v11  ;;  %p386_p13 = por %p385_p12, %p384_p11 }
  0x22   :  { %325 = vmatprep.subr.mxu0 %v409_v0 }
  0x23   :  { %326 = vmatpush3.msra.mxu0 %v199_v12  ;;  %p387_p0 = pnand %p386_p13, %p380_p10 }
  0x24   :  { %327 = vmatprep.subr.mxu0 %v409_v0 }
  0x25   :  { %328 = vmatpush3.msra.mxu0 %v198_v13 }
  0xde   :  { %v115_v7 = vpop.f32.mrf.mxu1 }
  0xdf   :  { %v116_v8 = vadd.f32 %v115_v7, %v40_v6 }
  0xe0   :  { %v313_v9 = vpop.f32.mrf.mxu1 }
  0xe1   :  { %v119_v10 = vmax.f32 %v116_v8, 0.0 }
  0xe3   :  { %319 = vmatmul.mubr.msk.f32.vlgmr.msra.gmra.mxu1 %vm123_vm3, %v119_v10 }
 0x1a3   :  { %v193_v15 = vpop.f32.mrf.mxu1 }
 0x1a4   :  { %v194_v16 = vadd.f32 %v193_v15, %v122_v14 }
 0x1a5   :  { %v320_v17 = vpop.f32.mrf.mxu1 }
 0x1a6   :  { %v197_v18 = vmax.f32 %v194_v16, 0.0 }
 0x1a8   :  { %330 = vmatmul.mubr.msk.f32.vlgmr.msra.gmra.mxu0 %vm203_vm4, %v197_v18 }
 0x268   :  { %v273_v20 = vpop.f32.mrf.mxu0 }
 0x269   :  { %v274_v21 = vadd.f32 %v273_v20, %v202_v19 }
 0x26a   :  { %v331_v22 = vpop.f32.mrf.mxu0 }
 0x26b   :  { %278 = vst.msk [vmem:[#allocation7] sm:$0x3] %vm277_vm5, %v274_v21 }
 0x26c   :  { %390 = shalt.err (!%p387_p0)
}
 0x26d   :  { %288 = dma.vmem_to_hbm [thread:$0]  %s286_s1, 32, %s438_s2, [#allocation4]  }
 0x26e   :  { %403 = dma.done.wait [#allocation4], 32  }
 0x26f   :  { %404 = vsyncadd [#allocation4], 4294967264 }
 0x270   :  { %292 = vsyncpa [#allocation3], 1 }
 0x271   :  { %293 = vsyncpa [#allocation6], 1 }
 0x272   :  { %294 = vsyncpa [#allocation4], 1 }

</bundles_post_ra>
